<compile_context>
chip_gen: v5e
topology: v5e:2x2
jax: 0.10.0
libtpu: 0.0.40
codegen_flags: <defaults>
</compile_context>

<pallas_src>
import functools

import jax
import jax.numpy as jnp
from jax.experimental import pallas as pl
from jax.experimental.pallas import tpu as pltpu

LANE = 128  # TPU vreg lane width


def _actor_kernel(act_ref, p_ref, out_ref, *, lane):
    # Activation slab: obs in lanes [0, lane), eps in lanes [lane, 2*lane).
    x = act_ref[:, :lane]                                 # (B, lane)
    eps = act_ref[:, lane:]                               # (B, lane)

    # Parameter slab — all views are static and 128-lane / 8-sublane aligned.
    w1 = p_ref[0:lane, 0:lane]                            # (lane, lane)   fc1 weight (zero-padded)
    wh = p_ref[lane:2 * lane, :]                          # (lane, 2*lane) [Wmu | Wstd]
    b1 = p_ref[2 * lane:2 * lane + 1, 0:lane]             # (1, lane)
    bh = p_ref[2 * lane + 1:2 * lane + 2, :]              # (1, 2*lane)    [bmu | bstd]
    lim = p_ref[2 * lane + 2:2 * lane + 3, 0:lane]        # (1, lane)      act_limit broadcast

    # fc1 + ReLU  (MXU matmul, f32 accumulate; padded K/N lanes are exact zeros)
    h = jnp.maximum(jnp.dot(x, w1, preferred_element_type=jnp.float32) + b1, 0.0)

    # fused heads: one MXU dot producing [mu | pre_std], split at the 128-lane boundary
    heads = jnp.dot(h, wh, preferred_element_type=jnp.float32) + bh
    mu = heads[:, :lane]
    pre = heads[:, lane:]

    # softplus (numerically-stable form, matches torch.nn.functional.softplus)
    std = jnp.log1p(jnp.exp(-jnp.abs(pre))) + jnp.maximum(pre, 0.0)

    # reparameterized sample -> tanh squash -> scale by action bound (padded lanes stay 0)
    z = mu + std * eps
    out_ref[...] = jnp.tanh(z) * lim                      # lane-dense (B, lane) store


def pack_actor_params(params, act_limit, lane=LANE):
    """Run ONCE (not per env step): pack all parameters + act_limit into one aligned slab.

    Slab layout (rows x 2*lane cols), everything not set is zero:
      rows [0, lane)           : W1       in cols [0, hidden)      (rows [0, obs_dim))
      rows [lane, 2*lane)      : Wmu      in cols [0, act_dim)     (rows [0, hidden) of section)
                                 Wstd     in cols [lane, lane+act_dim)
      row  2*lane              : b1       in cols [0, hidden)
      row  2*lane + 1          : bmu      in cols [0, act_dim), bstd in cols [lane, lane+act_dim)
      row  2*lane + 2          : act_limit broadcast across cols [0, lane)
    """
    obs_dim, hidden = params["w1"].shape
    act_dim = params["wmu"].shape[1]
    assert obs_dim <= lane and hidden <= lane and act_dim <= lane

    slab = jnp.zeros((2 * lane + 8, 2 * lane), jnp.float32)
    slab = slab.at[:obs_dim, :hidden].set(params["w1"])
    slab = slab.at[lane:lane + hidden, :act_dim].set(params["wmu"])
    slab = slab.at[lane:lane + hidden, lane:lane + act_dim].set(params["wstd"])
    slab = slab.at[2 * lane, :hidden].set(params["b1"].reshape(-1))
    slab = slab.at[2 * lane + 1, :act_dim].set(params["bmu"].reshape(-1))
    slab = slab.at[2 * lane + 1, lane:lane + act_dim].set(params["bstd"].reshape(-1))
    slab = slab.at[2 * lane + 2, :lane].set(jnp.float32(act_limit))
    return slab, act_dim


@functools.partial(jax.jit, static_argnames=("act_dim", "lane"))
def sac_continuous_forward(obs, eps, slab, *, act_dim, lane=LANE):
    """Pallas-TPU forward pass of SACContinuous (actor only), on a pre-packed param slab."""
    B, obs_dim = obs.shape
    # Pack the two per-step activations into ONE lane-aligned VMEM input (2 DMAs -> 1).
    acts = jnp.zeros((B, 2 * lane), jnp.float32)
    acts = acts.at[:, :obs_dim].set(obs)
    acts = acts.at[:, lane:lane + act_dim].set(eps)

    vmem = pl.BlockSpec(memory_space=pltpu.MemorySpace.VMEM)
    out = pl.pallas_call(
        functools.partial(_actor_kernel, lane=lane),
        out_shape=jax.ShapeDtypeStruct((B, lane), jnp.float32),
        in_specs=[vmem, vmem],
        out_specs=vmem,
    )(acts, slab)
    return out[:, :act_dim]   # slice the lane-padded output outside the kernel


def _init_linear(key, fan_in, fan_out):
    """Deterministic init mimicking nn.Linear default (uniform +-1/sqrt(fan_in)).
    Returned weight is (in, out) — already transposed for x @ W."""
    kw, kb = jax.random.split(key)
    bound = 1.0 / jnp.sqrt(fan_in)
    w = jax.random.uniform(kw, (fan_in, fan_out), jnp.float32, -bound, bound)
    b = jax.random.uniform(kb, (1, fan_out), jnp.float32, -bound, bound)
    return w, b


def _reference(obs, eps, params, act_limit):
    h = jnp.maximum(obs @ params["w1"] + params["b1"], 0.0)
    mu = h @ params["wmu"] + params["bmu"]
    std = jax.nn.softplus(h @ params["wstd"] + params["bstd"])
    return jnp.tanh(mu + std * eps) * act_limit


if __name__ == "__main__":
    # small model_config: obs_dim=16, hidden_dim=32, act_dim=4, act_limit=2.0, batch=8
    OBS_DIM, HIDDEN_DIM, ACT_DIM, ACT_LIMIT, BATCH = 16, 32, 4, 2.0, 8

    root = jax.random.PRNGKey(0)
    k_obs, k_eps, k1, k2, k3 = jax.random.split(root, 5)

    w1, b1 = _init_linear(k1, OBS_DIM, HIDDEN_DIM)
    wmu, bmu = _init_linear(k2, HIDDEN_DIM, ACT_DIM)
    wstd, bstd = _init_linear(k3, HIDDEN_DIM, ACT_DIM)
    params = {"w1": w1, "b1": b1, "wmu": wmu, "bmu": bmu, "wstd": wstd, "bstd": bstd}

    slab, act_dim = pack_actor_params(params, ACT_LIMIT)   # once, amortized over all steps

    obs = jax.random.normal(k_obs, (BATCH, OBS_DIM), jnp.float32)
    # reparameterization noise for Normal(mu, std).rsample(); drawn outside the kernel
    eps = jax.random.normal(k_eps, (BATCH, ACT_DIM), jnp.float32)

    action = sac_continuous_forward(obs, eps, slab, act_dim=act_dim)
    action = jax.block_until_ready(action)

    expected = _reference(obs, eps, params, ACT_LIMIT)

    assert action.shape == (BATCH, ACT_DIM)
    assert bool(jnp.all(jnp.isfinite(action)))
    assert bool(jnp.all(jnp.abs(action) <= ACT_LIMIT + 1e-6))
    assert bool(jnp.allclose(action, expected, rtol=1e-5, atol=1e-5))
    print("KERNEL_OK")
</pallas_src>

<mosaic_0001>
module attributes {stable_mosaic.version = 11 : i64} {
  func.func @_actor_kernel(%arg0: memref<8x256xf32, #tpu.memory_space<vmem>>, %arg1: memref<264x256xf32, #tpu.memory_space<vmem>>, %arg2: memref<8x128xf32, #tpu.memory_space<vmem>>) attributes {dimension_semantics = [], scalar_prefetch = 0 : i64, scratch_operands = 0 : i64, tpu.core_type = #tpu.core_type<tc>} {
    %c0 = arith.constant 0 : index
    %c0_0 = arith.constant 0 : index
    %0 = vector.load %arg0[%c0, %c0_0] : memref<8x256xf32, #tpu.memory_space<vmem>>, vector<8x128xf32>
    %c0_1 = arith.constant 0 : index
    %c128 = arith.constant 128 : index
    %1 = vector.load %arg0[%c0_1, %c128] : memref<8x256xf32, #tpu.memory_space<vmem>>, vector<8x128xf32>
    %c0_2 = arith.constant 0 : index
    %c0_3 = arith.constant 0 : index
    %2 = vector.load %arg1[%c0_2, %c0_3] : memref<264x256xf32, #tpu.memory_space<vmem>>, vector<128x128xf32>
    %c128_4 = arith.constant 128 : index
    %c0_5 = arith.constant 0 : index
    %3 = vector.load %arg1[%c128_4, %c0_5] : memref<264x256xf32, #tpu.memory_space<vmem>>, vector<128x256xf32>
    %c256 = arith.constant 256 : index
    %c0_6 = arith.constant 0 : index
    %4 = vector.load %arg1[%c256, %c0_6] : memref<264x256xf32, #tpu.memory_space<vmem>>, vector<1x128xf32>
    %c257 = arith.constant 257 : index
    %c0_7 = arith.constant 0 : index
    %5 = vector.load %arg1[%c257, %c0_7] : memref<264x256xf32, #tpu.memory_space<vmem>>, vector<1x256xf32>
    %c258 = arith.constant 258 : index
    %c0_8 = arith.constant 0 : index
    %6 = vector.load %arg1[%c258, %c0_8] : memref<264x256xf32, #tpu.memory_space<vmem>>, vector<1x128xf32>
    %cst = arith.constant dense<0.000000e+00> : vector<8x128xf32>
    %7 = tpu.matmul %0, %2, %cst {dimension_numbers = #tpu.dot_dimension_numbers<[1], [0], [0], [1], [0, 0, 1, 1], [], []>} : vector<8x128xf32>, vector<128x128xf32>, vector<8x128xf32> -> vector<8x128xf32>
    %8 = vector.broadcast %4 : vector<1x128xf32> to vector<8x128xf32>
    %9 = arith.addf %7, %8 : vector<8x128xf32>
    %cst_9 = arith.constant 0.000000e+00 : f32
    %10 = vector.broadcast %cst_9 : f32 to vector<8x128xf32>
    %11 = arith.maximumf %9, %10 : vector<8x128xf32>
    %cst_10 = arith.constant dense<0.000000e+00> : vector<8x256xf32>
    %12 = tpu.matmul %11, %3, %cst_10 {dimension_numbers = #tpu.dot_dimension_numbers<[1], [0], [0], [1], [0, 0, 1, 1], [], []>} : vector<8x128xf32>, vector<128x256xf32>, vector<8x256xf32> -> vector<8x256xf32>
    %13 = vector.broadcast %5 : vector<1x256xf32> to vector<8x256xf32>
    %14 = arith.addf %12, %13 : vector<8x256xf32>
    %15 = vector.extract_strided_slice %14 {offsets = [0, 0], sizes = [8, 128], strides = [1, 1]} : vector<8x256xf32> to vector<8x128xf32>
    %16 = vector.extract_strided_slice %14 {offsets = [0, 128], sizes = [8, 128], strides = [1, 1]} : vector<8x256xf32> to vector<8x128xf32>
    %17 = math.absf %16 : vector<8x128xf32>
    %cst_11 = arith.constant 0.000000e+00 : f32
    %18 = vector.broadcast %cst_11 : f32 to vector<8x128xf32>
    %19 = arith.subf %18, %17 : vector<8x128xf32>
    %20 = math.exp %19 : vector<8x128xf32>
    %21 = math.log1p %20 : vector<8x128xf32>
    %cst_12 = arith.constant 0.000000e+00 : f32
    %22 = vector.broadcast %cst_12 : f32 to vector<8x128xf32>
    %23 = arith.maximumf %16, %22 : vector<8x128xf32>
    %24 = arith.addf %21, %23 : vector<8x128xf32>
    %25 = arith.mulf %24, %1 : vector<8x128xf32>
    %26 = arith.addf %15, %25 : vector<8x128xf32>
    %27 = math.tanh %26 : vector<8x128xf32>
    %28 = vector.broadcast %6 : vector<1x128xf32> to vector<8x128xf32>
    %29 = arith.mulf %27, %28 : vector<8x128xf32>
    %c0_13 = arith.constant 0 : index
    %c0_14 = arith.constant 0 : index
    %30 = vector.load %arg2[%c0_13, %c0_14] : memref<8x128xf32, #tpu.memory_space<vmem>>, vector<8x128xf32>
    tpu.vector_store %arg2[%c0_13, %c0_14], %29 {strides = array<i32>} : memref<8x128xf32, #tpu.memory_space<vmem>>, vector<8x128xf32>,
    return
  }
}

</mosaic_0001>

<bundles_post_ra>
// kernel: sac_continuous_forward.1
= control target key start
LH: loop header
LB: loop body
LE: loop exit
PB: predicated region body
PF: predicated region fallthrough
CT: control target
= control target key end

     0   :  { %7 = vsyncpa [#allocation3], 0  ;;  %s207_s12 = smov [#allocation2]   ;;  %s208_s14 = smov 256   ;;  %s237_s0 = inlined_call_operand.vmem [shape: f32[8,256], index: 0, kind: input, shape index: {}]   ;;  %s238_s1 = inlined_call_operand.hbm [shape: f32[264,256], index: 1, kind: input, shape index: {}]   ;;  %s239_s2 = inlined_call_operand.vmem [shape: f32[8,128], index: 2, kind: output, shape index: {}]  }
   0x1   :  { %s14_s11 = sshll.u32 %s238_s1, 4  ;;  %s16_s13 = sshll.u32 %s207_s12, 4  ;;  %s15_s11 = int_to_ptr.hbm [resolvable:$true] %s14_s11  ;;  %s17_s13 = int_to_ptr.vmem [resolvable:$true] %s16_s13 }
   0x2   :  { %s209_s15 = smov 16  }
   0x3   :  { %22 = dma.hbm_to_vmem [thread:$0]  %s15_s11, 8448, %s17_s13, [#allocation3], %s208_s14, %s208_s14, %s209_s15  }
   0x4   :  { %205 = dma.done.wait [#allocation3], 8448  }
   0x5   :  { %206 = vsyncadd [#allocation3], 4294958848  ;;  %v44_v0 = vld [vmem:[#allocation2 + $0xf0] sm:$0xff]  ;;  %v43_v1 = vld [vmem:[#allocation2 + $0xe0] sm:$0xff] }
   0x6   :  { %81 = vmatpush.msra.mxu0 %v44_v0  ;;  %v42_v2 = vld [vmem:[#allocation2 + $0xd0] sm:$0xff]  ;;  %v41_v3 = vld [vmem:[#allocation2 + $0xc0] sm:$0xff]  ;;  %v76_v6 = vld [vmem:[#allocation2 + $0x1f8] sm:$0xff] }
   0x7   :  { %v40_v4 = vld [vmem:[#allocation2 + $0xb0] sm:$0xff]  ;;  %v73_v7 = vld [vmem:[#allocation2 + $0x1e0] sm:$0xff]  ;;  %v74_v8 = vld [vmem:[#allocation2 + $0x1e8] sm:$0xff]  ;;  %127 = vmatpush.msra.mxu2 %v76_v6 }
   0x8   :  { %82 = vmatpush.msra.mxu0 %v43_v1  ;;  %v75_v5 = vld [vmem:[#allocation2 + $0x1f0] sm:$0xff]  ;;  %v39_v10 = vld [vmem:[#allocation2 + $0xa0] sm:$0xff]  ;;  %v72_v11 = vld [vmem:[#allocation2 + $0x1d8] sm:$0xff] }
   0x9   :  { %107 = vmatpush.msra.mxu1 %v75_v5  ;;  %v71_v9 = vld [vmem:[#allocation2 + $0x1d0] sm:$0xff]  ;;  %128 = vmatpush.msra.mxu2 %v74_v8  ;;  %v69_v12 = vld [vmem:[#allocation2 + $0x1c0] sm:$0xff]  ;;  %v70_v14 = vld [vmem:[#allocation2 + $0x1c8] sm:$0xff] }
   0xa   :  { %83 = vmatpush.msra.mxu0 %v42_v2  ;;  %v38_v13 = vld [vmem:[#allocation2 + $0x90] sm:$0xff]  ;;  %v37_v16 = vld [vmem:[#allocation2 + $0x80] sm:$0xff]  ;;  %v68_v17 = vld [vmem:[#allocation2 + $0x1b8] sm:$0xff] }
   0xb   :  { %108 = vmatpush.msra.mxu1 %v73_v7  ;;  %129 = vmatpush.msra.mxu2 %v72_v11  ;;  %v67_v15 = vld [vmem:[#allocation2 + $0x1b0] sm:$0xff]  ;;  %v65_v18 = vld [vmem:[#allocation2 + $0x1a0] sm:$0xff]  ;;  %v66_v20 = vld [vmem:[#allocation2 + $0x1a8] sm:$0xff] }
   0xc   :  { %84 = vmatpush.msra.mxu0 %v41_v3  ;;  %v36_v19 = vld [vmem:[#allocation2 + $0x70] sm:$0xff]  ;;  %v35_v22 = vld [vmem:[#allocation2 + $0x60] sm:$0xff]  ;;  %v64_v23 = vld [vmem:[#allocation2 + $0x198] sm:$0xff] }
   0xd   :  { %109 = vmatpush.msra.mxu1 %v71_v9  ;;  %130 = vmatpush.msra.mxu2 %v70_v14  ;;  %v63_v21 = vld [vmem:[#allocation2 + $0x190] sm:$0xff]  ;;  %v61_v24 = vld [vmem:[#allocation2 + $0x180] sm:$0xff]  ;;  %v62_v26 = vld [vmem:[#allocation2 + $0x188] sm:$0xff] }
   0xe   :  { %85 = vmatpush.msra.mxu0 %v40_v4  ;;  %v34_v25 = vld [vmem:[#allocation2 + $0x50] sm:$0xff]  ;;  %v33_v28 = vld [vmem:[#allocation2 + $0x40] sm:$0xff]  ;;  %v60_v29 = vld [vmem:[#allocation2 + $0x178] sm:$0xff] }
   0xf   :  { %110 = vmatpush.msra.mxu1 %v69_v12  ;;  %131 = vmatpush.msra.mxu2 %v68_v17  ;;  %v59_v27 = vld [vmem:[#allocation2 + $0x170] sm:$0xff]  ;;  %v57_v30 = vld [vmem:[#allocation2 + $0x160] sm:$0xff]  ;;  %v58_v32 = vld [vmem:[#allocation2 + $0x168] sm:$0xff] }
  0x10   :  { %86 = vmatpush.msra.mxu0 %v39_v10  ;;  %v32_v31 = vld [vmem:[#allocation2 + $0x30] sm:$0xff]  ;;  %v31_v34 = vld [vmem:[#allocation2 + $0x20] sm:$0xff]  ;;  %v56_v35 = vld [vmem:[#allocation2 + $0x158] sm:$0xff] }
  0x11   :  { %111 = vmatpush.msra.mxu1 %v67_v15  ;;  %132 = vmatpush.msra.mxu2 %v66_v20  ;;  %v55_v33 = vld [vmem:[#allocation2 + $0x150] sm:$0xff]  ;;  %v53_v36 = vld [vmem:[#allocation2 + $0x140] sm:$0xff]  ;;  %v54_v38 = vld [vmem:[#allocation2 + $0x148] sm:$0xff] }
  0x12   :  { %87 = vmatpush.msra.mxu0 %v38_v13  ;;  %v30_v37 = vld [vmem:[#allocation2 + $0x10] sm:$0xff]  ;;  %v29_v40 = vld [vmem:[#allocation2] sm:$0xff]  ;;  %v52_v41 = vld [vmem:[#allocation2 + $0x138] sm:$0xff] }
  0x13   :  { %112 = vmatpush.msra.mxu1 %v65_v18  ;;  %133 = vmatpush.msra.mxu2 %v64_v23  ;;  %v51_v39 = vld [vmem:[#allocation2 + $0x130] sm:$0xff]  ;;  %v27_v42 = vld [vmem:[%s237_s0] sm:$0xff]  ;;  %v50_v44 = vld [vmem:[#allocation2 + $0x128] sm:$0xff] }
  0x14   :  { %88 = vmatpush.msra.mxu0 %v37_v16  ;;  %v49_v43 = vld [vmem:[#allocation2 + $0x120] sm:$0xff]  ;;  %v47_v45 = vld [vmem:[#allocation2 + $0x110] sm:$0xff]  ;;  %v48_v46 = vld [vmem:[#allocation2 + $0x118] sm:$0xff] }
  0x15   :  { %113 = vmatpush.msra.mxu1 %v63_v21  ;;  %134 = vmatpush.msra.mxu2 %v62_v26  ;;  %v45_v47 = vld [vmem:[#allocation2 + $0x100] sm:$0xff]  ;;  %v46_v48 = vld [vmem:[#allocation2 + $0x108] sm:$0xff] }
  0x16   :  { %89 = vmatpush.msra.mxu0 %v36_v19  ;;  %v77_v49 = vld [vmem:[#allocation2 + $0x200] ss:$0 sm:$0xff]  ;;  %v79_v53 = vld [vmem:[#allocation2 + $0x201] ss:$8 sm:$0x3] }
  0x17   :  { %114 = vmatpush.msra.mxu1 %v61_v24  ;;  %135 = vmatpush.msra.mxu2 %v60_v29  ;;  %v104_v54 = vperm.slane %v79_v53, 1  ;;  %v103_v4 = vperm.slane %v79_v53, 0  ;;  %v28_v7 = vld [vmem:[%s237_s0 + $0x8] sm:$0xff]  ;;  %v80_v13 = vld [vmem:[#allocation2 + $0x202] ss:$0 sm:$0xff] }
  0x18   :  { %90 = vmatpush.msra.mxu0 %v35_v22 }
  0x19   :  { %115 = vmatpush.msra.mxu1 %v59_v27  ;;  %136 = vmatpush.msra.mxu2 %v58_v32 }
  0x1a   :  { %91 = vmatpush.msra.mxu0 %v34_v25 }
  0x1b   :  { %116 = vmatpush.msra.mxu1 %v57_v30  ;;  %137 = vmatpush.msra.mxu2 %v56_v35 }
  0x1c   :  { %92 = vmatpush.msra.mxu0 %v33_v28 }
  0x1d   :  { %117 = vmatpush.msra.mxu1 %v55_v33  ;;  %138 = vmatpush.msra.mxu2 %v54_v38 }
  0x1e   :  { %93 = vmatpush.msra.mxu0 %v32_v31 }
  0x1f   :  { %118 = vmatpush.msra.mxu1 %v53_v36  ;;  %139 = vmatpush.msra.mxu2 %v52_v41 }
  0x20   :  { %94 = vmatpush.msra.mxu0 %v31_v34 }
  0x21   :  { %119 = vmatpush.msra.mxu1 %v51_v39  ;;  %140 = vmatpush.msra.mxu2 %v50_v44 }
  0x22   :  { %95 = vmatpush.msra.mxu0 %v30_v37 }
  0x23   :  { %120 = vmatpush.msra.mxu1 %v49_v43  ;;  %141 = vmatpush.msra.mxu2 %v48_v46 }
  0x24   :  { %96 = vmatpush.msra.mxu0 %v29_v40 }
  0x25   :  { %97 = vmatmul.f32.vlgmr.msra.gmra.mxu0 %v27_v42  ;;  %121 = vmatpush.msra.mxu1 %v47_v45 }
  0x26   :  { %142 = vmatpush.msra.mxu2 %v46_v48 }
  0x27   :  { %122 = vmatpush.msra.mxu1 %v45_v47 }
  0xa2   :  { %v98_v50 = vpop.f32.mrf.mxu0 }
  0xa3   :  { %v99_v51 = vadd.f32 %v98_v50, %v77_v49 }
  0xa5   :  { %v101_v52 = vmax.f32 %v99_v51, 0.0 }
  0xa7   :  { %123 = vmatmul.f32.vlgmr.msra.gmra.mxu1 %v101_v52  ;;  %143 = vmatmul.f32.vlgmr.msra.gmra.mxu2 %v101_v52 }
 0x124   :  { %v124_v6 = vpop.f32.mrf.mxu1 }
 0x125   :  { %v125_v10 = vadd.f32 %v124_v6, %v103_v4 }
 0x12a   :  { %v144_v55 = vpop.f32.mrf.mxu2 }
 0x12b   :  { %v145_v56 = vadd.f32 %v144_v55, %v104_v54 }
 0x12d   :  { %v147_v57 = vand.u32 2147483647, %v145_v56  ;;  %v160_v5 = vmax.f32 %v145_v56, 0.0 }
 0x12f   :  { %v148_v58 = vsub.f32 0.0, %v147_v57 }
 0x131   :  { %v149_v59 = vmul.f32 1.442695, %v148_v58 }
 0x133   :  { %175 = vpow2.f32 %v149_v59 }
 0x139   :  { %v176_v60 = vpop.eup %175 }
 0x13a   :  { %v151_v61 = vadd.f32 1.0, %v176_v60  ;;  %v154_v62 = vmul.f32 -0.5, %v176_v60  ;;  %v157_v0 = vand.u32 2147483647, %v176_v60 }
 0x13c   :  { %177 = vlog2.f32 %v151_v61  ;;  %v155_v63 = vadd.f32 1.0, %v154_v62  ;;  %vm158_vm0 = vcmp.lt.f32.partialorder %v157_v0, 0.0004427343 }
 0x13e   :  { %v156_v3 = vmul.f32 %v176_v60, %v155_v63 }
 0x142   :  { %v178_v1 = vpop.eup %177 }
 0x143   :  { %v153_v2 = vmul.f32 0.6931472, %v178_v1 }
 0x145   :  { %v159_v8 = vsel %vm158_vm0, %v156_v3, %v153_v2 }
 0x146   :  { %v161_v9 = vadd.f32 %v160_v5, %v159_v8 }
 0x148   :  { %v162_v11 = vmul.f32 %v161_v9, %v28_v7 }
 0x14a   :  { %v163_v12 = vadd.f32 %v162_v11, %v125_v10 }
 0x14c   :  { %179 = vtanh.f32 %v163_v12 }
 0x152   :  { %v180_v14 = vpop.eup %179 }
 0x153   :  { %v165_v15 = vmul.f32 %v180_v14, %v80_v13 }
 0x155   :  { %166 = vst [vmem:[%s239_s2] sm:$0xff] %v165_v15 }
 0x156   :  { %171 = vsyncpa [#allocation3], 1 }

</bundles_post_ra>
